<compile_context>
chip_gen: v7x
topology: tpu7x:2x2x1
jax: 0.10.0
libtpu: 0.0.40
codegen_flags: <defaults>
</compile_context>

<pallas_src>
import math

import jax
import jax.numpy as jnp
from jax import lax
from jax.experimental import pallas as pl
from jax.experimental.pallas import tpu as pltpu


def _round_up(x, m):
    return ((x + m - 1) // m) * m


# ---------------------------------------------------------------------------
# Fused kernel: y[B, OUT] = x[B, IN] @ (M*W)[OUT, IN]^T + b[1, OUT]
# Grid = (B tiles, OUT tiles, IN tiles); IN (reduction) is the last axis.
# ---------------------------------------------------------------------------
def _filter_linear_kernel(x_ref, w_ref, m_ref, b_ref, o_ref, acc_ref):
    @pl.when(pl.program_id(2) == 0)
    def _():
        acc_ref[...] = jnp.zeros_like(acc_ref)

    mw = m_ref[...] * w_ref[...]                      # (tn, tk) masked weight tile (VPU)
    acc_ref[...] += lax.dot_general(                  # x(tb,tk) . mw(tn,tk)^T -> (tb,tn)
        x_ref[...], mw,
        dimension_numbers=(((1,), (1,)), ((), ())),
        preferred_element_type=jnp.float32)

    @pl.when(pl.program_id(2) == pl.num_programs(2) - 1)
    def _():
        o_ref[...] = (acc_ref[...] + b_ref[...]).astype(o_ref.dtype)


def filter_linear(x, weight, filter_mask, bias=None, *,
                  tb=128, tn=128, tk=512, compute_dtype=None):
    """FilterLinear forward: x @ (filter_mask * weight)^T + bias."""
    B, IN = x.shape
    OUT, IN_w = weight.shape
    assert IN_w == IN and filter_mask.shape == weight.shape
    out_dtype = x.dtype
    if bias is None:
        bias = jnp.zeros((OUT,), jnp.float32)

    # Tile sizes: lane (last) dims multiples of 128, sublane dims multiples of 8.
    tb = min(max(8, (tb // 8) * 8), _round_up(B, 8))          # sublane of x / out
    tn = min(max(128, (tn // 128) * 128), _round_up(OUT, 128))  # lane of out / sublane of W
    tk = min(max(128, (tk // 128) * 128), _round_up(IN, 128))   # lane of x / W (reduction)
    Bp, OUTp, INp = _round_up(B, tb), _round_up(OUT, tn), _round_up(IN, tk)

    f32 = jnp.float32
    xp = jnp.pad(x.astype(f32), ((0, Bp - B), (0, INp - IN)))
    wp = jnp.pad(weight.astype(f32), ((0, OUTp - OUT), (0, INp - IN)))
    mp = jnp.pad(filter_mask.astype(f32), ((0, OUTp - OUT), (0, INp - IN)))
    bp = jnp.pad(bias.astype(f32), (0, OUTp - OUT)).reshape(1, OUTp)

    if compute_dtype is not None:        # e.g. jnp.bfloat16: halves HBM bytes,
        xp = xp.astype(compute_dtype)    # f32 accumulation kept via
        wp = wp.astype(compute_dtype)    # preferred_element_type (mask is 0/1,
        mp = mp.astype(compute_dtype)    # exact in bf16).

    grid = (Bp // tb, OUTp // tn, INp // tk)
    yp = pl.pallas_call(
        _filter_linear_kernel,
        out_shape=jax.ShapeDtypeStruct((Bp, OUTp), out_dtype),
        grid_spec=pltpu.PrefetchScalarGridSpec(
            num_scalar_prefetch=0,
            grid=grid,
            in_specs=[
                pl.BlockSpec((tb, tk), lambda i, j, k: (i, k)),   # x
                pl.BlockSpec((tn, tk), lambda i, j, k: (j, k)),   # W
                pl.BlockSpec((tn, tk), lambda i, j, k: (j, k)),   # mask
                pl.BlockSpec((1, tn), lambda i, j, k: (0, j)),    # bias
            ],
            out_specs=pl.BlockSpec((tb, tn), lambda i, j, k: (i, j)),
            scratch_shapes=[pltpu.VMEM((tb, tn), jnp.float32)],
        ),
        compiler_params=pltpu.CompilerParams(
            dimension_semantics=("parallel", "parallel", "arbitrary")),
    )(xp, wp, mp, bp)

    return yp[:B, :OUT]


if __name__ == "__main__":
    key = jax.random.PRNGKey(0)
    kx, kw, kb, kx2, kw2, kb2, km2 = jax.random.split(key, 7)

    # --- Case 1: GRU-D usage (identity mask, square), small shapes ----------
    batch, in_features, out_features = 8, 32, 32
    stdv = 1.0 / math.sqrt(in_features)            # reset_parameters(): U(-stdv, stdv)
    weight = jax.random.uniform(kw, (out_features, in_features), jnp.float32,
                                minval=-stdv, maxval=stdv)
    bias = jax.random.uniform(kb, (out_features,), jnp.float32,
                              minval=-stdv, maxval=stdv)
    filter_mask = jnp.eye(out_features, in_features, dtype=jnp.float32)
    x = jax.random.normal(kx, (batch, in_features), jnp.float32)

    y = filter_linear(x, weight, filter_mask, bias)
    jax.block_until_ready(y)
    y_ref = x @ (filter_mask * weight).T + bias
    assert y.shape == (batch, out_features)
    assert jnp.allclose(y, y_ref, atol=1e-5, rtol=1e-5)

    # bf16 operands / f32 accumulation path (MXU-native, halves HBM traffic).
    y_bf16 = filter_linear(x, weight, filter_mask, bias,
                           compute_dtype=jnp.bfloat16)
    jax.block_until_ready(y_bf16)
    assert jnp.allclose(y_bf16, y_ref, atol=5e-2, rtol=5e-2)

    # --- Case 2: general 0/1 mask, non-aligned shapes (multi-tile + padding) -
    batch2, in2, out2 = 40, 300, 200
    stdv2 = 1.0 / math.sqrt(in2)
    weight2 = jax.random.uniform(kw2, (out2, in2), jnp.float32,
                                 minval=-stdv2, maxval=stdv2)
    bias2 = jax.random.uniform(kb2, (out2,), jnp.float32,
                               minval=-stdv2, maxval=stdv2)
    mask2 = (jax.random.uniform(km2, (out2, in2)) < 0.5).astype(jnp.float32)
    x2 = jax.random.normal(kx2, (batch2, in2), jnp.float32)

    y2 = filter_linear(x2, weight2, mask2, bias2)
    jax.block_until_ready(y2)
    y2_ref = x2 @ (mask2 * weight2).T + bias2
    assert y2.shape == (batch2, out2)
    assert jnp.allclose(y2, y2_ref, atol=1e-4, rtol=1e-4)

    # --- Case 3: no bias -----------------------------------------------------
    y3 = filter_linear(x2, weight2, mask2, None)
    jax.block_until_ready(y3)
    assert jnp.allclose(y3, x2 @ (mask2 * weight2).T, atol=1e-4, rtol=1e-4)

    print("KERNEL_OK")
</pallas_src>

<mosaic_0001>
module attributes {stable_mosaic.version = 11 : i64} {
  func.func @_filter_linear_kernel(%arg0: i32, %arg1: i32, %arg2: i32, %arg3: memref<8x128xf32, #tpu.memory_space<vmem>>, %arg4: memref<128x128xf32, #tpu.memory_space<vmem>>, %arg5: memref<128x128xf32, #tpu.memory_space<vmem>>, %arg6: memref<1x128xf32, #tpu.memory_space<vmem>>, %arg7: memref<8x128xf32, #tpu.memory_space<vmem>>, %arg8: memref<8x128xf32, #tpu.memory_space<vmem>>) attributes {dimension_semantics = [#tpu.dimension_semantics<parallel>, #tpu.dimension_semantics<parallel>, #tpu.dimension_semantics<arbitrary>], iteration_bounds = array<i64: 1, 1, 1>, scalar_prefetch = 0 : i64, scratch_operands = 1 : i64, tpu.core_type = #tpu.core_type<tc>, window_params = [{transform_indices = @transform_0, window_bounds = array<i64: 8, 128>}, {transform_indices = @transform_1, window_bounds = array<i64: 128, 128>}, {transform_indices = @transform_2, window_bounds = array<i64: 128, 128>}, {transform_indices = @transform_3, window_bounds = array<i64: 1, 128>}, {transform_indices = @transform_4, window_bounds = array<i64: 8, 128>}]} {
    %c0_i32 = arith.constant 0 : i32
    %0 = arith.cmpi eq, %arg2, %c0_i32 : i32
    %1 = arith.extui %0 : i1 to i32
    %c0_i32_0 = arith.constant 0 : i32
    %2 = arith.cmpi ne, %1, %c0_i32_0 : i32
    scf.if %2 {
      %cst_12 = arith.constant 0.000000e+00 : f32
      %14 = vector.broadcast %cst_12 : f32 to vector<8x128xf32>
      %c0_13 = arith.constant 0 : index
      %c0_14 = arith.constant 0 : index
      %15 = vector.load %arg8[%c0_13, %c0_14] : memref<8x128xf32, #tpu.memory_space<vmem>>, vector<8x128xf32>
      tpu.vector_store %arg8[%c0_13, %c0_14], %14 {strides = array<i32>} : memref<8x128xf32, #tpu.memory_space<vmem>>, vector<8x128xf32>,
    } else {
    }
    %c0 = arith.constant 0 : index
    %c0_1 = arith.constant 0 : index
    %3 = vector.load %arg5[%c0, %c0_1] : memref<128x128xf32, #tpu.memory_space<vmem>>, vector<128x128xf32>
    %c0_2 = arith.constant 0 : index
    %c0_3 = arith.constant 0 : index
    %4 = vector.load %arg4[%c0_2, %c0_3] : memref<128x128xf32, #tpu.memory_space<vmem>>, vector<128x128xf32>
    %5 = arith.mulf %3, %4 : vector<128x128xf32>
    %c0_4 = arith.constant 0 : index
    %c0_5 = arith.constant 0 : index
    %6 = vector.load %arg8[%c0_4, %c0_5] : memref<8x128xf32, #tpu.memory_space<vmem>>, vector<8x128xf32>
    %c0_6 = arith.constant 0 : index
    %c0_7 = arith.constant 0 : index
    %7 = vector.load %arg3[%c0_6, %c0_7] : memref<8x128xf32, #tpu.memory_space<vmem>>, vector<8x128xf32>
    %cst = arith.constant dense<0.000000e+00> : vector<8x128xf32>
    %8 = tpu.matmul %7, %5, %cst {dimension_numbers = #tpu.dot_dimension_numbers<[1], [1], [0], [0], [0, 0, 1, 0], [], []>} : vector<8x128xf32>, vector<128x128xf32>, vector<8x128xf32> -> vector<8x128xf32>
    %9 = arith.addf %6, %8 : vector<8x128xf32>
    %c0_8 = arith.constant 0 : index
    %c0_9 = arith.constant 0 : index
    %10 = vector.load %arg8[%c0_8, %c0_9] : memref<8x128xf32, #tpu.memory_space<vmem>>, vector<8x128xf32>
    tpu.vector_store %arg8[%c0_8, %c0_9], %9 {strides = array<i32>} : memref<8x128xf32, #tpu.memory_space<vmem>>, vector<8x128xf32>,
    %c0_i32_10 = arith.constant 0 : i32
    %11 = arith.cmpi eq, %arg2, %c0_i32_10 : i32
    %12 = arith.extui %11 : i1 to i32
    %c0_i32_11 = arith.constant 0 : i32
    %13 = arith.cmpi ne, %12, %c0_i32_11 : i32
    scf.if %13 {
      %c0_12 = arith.constant 0 : index
      %c0_13 = arith.constant 0 : index
      %14 = vector.load %arg8[%c0_12, %c0_13] : memref<8x128xf32, #tpu.memory_space<vmem>>, vector<8x128xf32>
      %c0_14 = arith.constant 0 : index
      %c0_15 = arith.constant 0 : index
      %15 = vector.load %arg6[%c0_14, %c0_15] : memref<1x128xf32, #tpu.memory_space<vmem>>, vector<1x128xf32>
      %16 = vector.broadcast %15 : vector<1x128xf32> to vector<8x128xf32>
      %17 = arith.addf %14, %16 : vector<8x128xf32>
      %c0_16 = arith.constant 0 : index
      %c0_17 = arith.constant 0 : index
      %18 = vector.load %arg7[%c0_16, %c0_17] : memref<8x128xf32, #tpu.memory_space<vmem>>, vector<8x128xf32>
      tpu.vector_store %arg7[%c0_16, %c0_17], %17 {strides = array<i32>} : memref<8x128xf32, #tpu.memory_space<vmem>>, vector<8x128xf32>,
    } else {
    }
    return
  }
  func.func @transform_0(%arg0: i32, %arg1: i32, %arg2: i32) -> (i32, i32) {
    %c0_i32 = arith.constant 0 : i32
    return %arg0, %arg2 : i32, i32
  }
  func.func @transform_1(%arg0: i32, %arg1: i32, %arg2: i32) -> (i32, i32) {
    %c0_i32 = arith.constant 0 : i32
    return %arg1, %arg2 : i32, i32
  }
  func.func @transform_2(%arg0: i32, %arg1: i32, %arg2: i32) -> (i32, i32) {
    %c0_i32 = arith.constant 0 : i32
    return %arg1, %arg2 : i32, i32
  }
  func.func @transform_3(%arg0: i32, %arg1: i32, %arg2: i32) -> (i32, i32) {
    %c0_i32 = arith.constant 0 : i32
    %c0_i32_0 = arith.constant 0 : i32
    return %c0_i32, %arg1 : i32, i32
  }
  func.func @transform_4(%arg0: i32, %arg1: i32, %arg2: i32) -> (i32, i32) {
    %c0_i32 = arith.constant 0 : i32
    return %arg0, %arg1 : i32, i32
  }
}

</mosaic_0001>

<bundles_post_ra>
// kernel: tpu_custom_call.1
= control target key start
LH: loop header
LB: loop body
LE: loop exit
PB: predicated region body
PF: predicated region fallthrough
CT: control target
= control target key end

     0   :  { %9 = vsyncpa [#allocation4], 0  ;;  %s492_s0 = inlined_call_operand.hbm [shape: f32[8,128], index: 0, kind: input, shape index: {}]   ;;  %s493_s1 = inlined_call_operand.hbm [shape: f32[128,128], index: 1, kind: input, shape index: {}]   ;;  %s494_s2 = inlined_call_operand.hbm [shape: f32[128,128], index: 2, kind: input, shape index: {}]   ;;  %s495_s3 = inlined_call_operand.vmem [shape: f32[1,128], index: 3, kind: input, shape index: {}]   ;;  %s496_s4 = inlined_call_operand.hbm [shape: f32[8,128], index: 4, kind: output, shape index: {}]  }
   0x1   :  { %10 = vsyncpa [#allocation7], 0 }
   0x2   :  { %11 = vsyncpa [#allocation5], 0  ;;  %s393_s15 = smov [#allocation6]   ;;  %s299_s19 = scalar_lea.hbm %s493_s1, 2048 }
   0x3   :  { %s27_s16 = sshll.u32 %s393_s15, 4  ;;  %p300_p0 = scmp.ne.s32.totalorder %s493_s1, %s299_s19  ;;  %s28_s16 = int_to_ptr.vmem [resolvable:$true] %s27_s16 }
   0x4   :  { %p303_p1 = scmp.lt.u32.totalorder %s299_s19, %s493_s1 }
   0x6   :  { %p305_p2 = pnand %p303_p1, %p300_p0 }
   0x8   :  { %308 = shalt.err (!%p305_p2)
}
   0x9   :  { %s309_s24 = scalar_lea.vmem %s28_s16, 2048  ;;  %p314_p4 = scmp.lt.s32.totalorder %s28_s16, %s28_s16 }
   0xa   :  { %p310_p3 = scmp.ne.s32.totalorder %s28_s16, %s309_s24  ;;  %p315_p5 = scmp.lt.s32.totalorder %s309_s24, %s309_s24 }
   0xc   :  { %p316_p6 = por %p315_p5, %p314_p4 }
   0xe   :  { %p317_p7 = pnand %p316_p6, %p310_p3 }
  0x10   :  { %320 = shalt.err (!%p317_p7)
}
  0x11   :  { %s394_s25 = smov 128   ;;  %s395_s26 = smov 8  }
  0x12   :  { %33 = dma.hbm_to_vmem [thread:$0]  %s493_s1, 2048, %s28_s16, [#allocation7], %s394_s25, %s394_s25, %s395_s26  }
  0x13   :  { %s396_s29 = smov [#allocation3]   ;;  %s397_s5 = smov [#allocation8]  }
  0x14   :  { %s18_s30 = sshll.u32 %s396_s29, 4  ;;  %s39_s6 = sshll.u32 %s397_s5, 4  ;;  %s19_s30 = int_to_ptr.vmem [resolvable:$true] %s18_s30  ;;  %s40_s6 = int_to_ptr.vmem [resolvable:$true] %s39_s6 }
  0x15   :  { %s321_s9 = scalar_lea.hbm %s492_s0, 128 }
  0x16   :  { %p322_p8 = scmp.ne.s32.totalorder %s492_s0, %s321_s9  ;;  %p325_p9 = scmp.lt.u32.totalorder %s321_s9, %s492_s0 }
  0x18   :  { %p327_p10 = pnand %p325_p9, %p322_p8 }
  0x1a   :  { %330 = shalt.err (!%p327_p10)
}
  0x1b   :  { %s331_s1 = scalar_lea.vmem %s19_s30, 128  ;;  %p336_p12 = scmp.lt.s32.totalorder %s19_s30, %s19_s30 }
  0x1c   :  { %p332_p11 = scmp.ne.s32.totalorder %s19_s30, %s331_s1  ;;  %p337_p13 = scmp.lt.s32.totalorder %s331_s1, %s331_s1 }
  0x1e   :  { %p338_p0 = por %p337_p13, %p336_p12 }
  0x20   :  { %p339_p1 = pnand %p338_p0, %p332_p11 }
  0x22   :  { %342 = shalt.err (!%p339_p1)
}
  0x23   :  { %21 = dma.hbm_to_vmem [thread:$0]  %s492_s0, 128, %s19_s30, [#allocation4]  }
  0x24   :  { %s343_s18 = scalar_lea.hbm %s494_s2, 2048 }
  0x25   :  { %p344_p2 = scmp.ne.s32.totalorder %s494_s2, %s343_s18  ;;  %p347_p3 = scmp.lt.u32.totalorder %s343_s18, %s494_s2 }
  0x27   :  { %p349_p4 = pnand %p347_p3, %p344_p2 }
  0x29   :  { %352 = shalt.err (!%p349_p4)
}
  0x2a   :  { %s353_s23 = scalar_lea.vmem %s40_s6, 2048  ;;  %p358_p6 = scmp.lt.s32.totalorder %s40_s6, %s40_s6 }
  0x2b   :  { %p354_p5 = scmp.ne.s32.totalorder %s40_s6, %s353_s23  ;;  %p359_p7 = scmp.lt.s32.totalorder %s353_s23, %s353_s23 }
  0x2d   :  { %p360_p8 = por %p359_p7, %p358_p6 }
  0x2f   :  { %p361_p9 = pnand %p360_p8, %p354_p5 }
  0x31   :  { %364 = shalt.err (!%p361_p9)
}
  0x32   :  { %45 = dma.hbm_to_vmem [thread:$0]  %s494_s2, 2048, %s40_s6, [#allocation7], %s394_s25, %s394_s25, %s395_s26  }
  0x33   :  { %387 = dma.done.wait [#allocation4], 128  }
  0x34   :  { %388 = vsyncadd [#allocation4], 4294967168 }
  0x35   :  { %389 = dma.done.wait [#allocation7], 4096  }
  0x36   :  { %390 = vsyncadd [#allocation7], 4294963200  ;;  %v398_v0 = vmov 0.0|0.0   ;;  %vm399_vm0 = vmmov 0   ;;  %v400_v1 = vmov 0.0   ;;  %v62_v2 = vld [vmem:[#allocation8] sm:$0xff] }
  0x37   :  { %266 = vmatprep.subr.bf16.mxu0 %v398_v0  ;;  %263 = vmatprep.mubr.msk.f32.mxu0 %vm399_vm0, %v400_v1  ;;  %v63_v3 = vld [vmem:[#allocation8 + $0x8] sm:$0xff]  ;;  %v78_v4 = vld [vmem:[#allocation6] sm:$0xff]  ;;  %v64_v8 = vld [vmem:[#allocation8 + $0x10] sm:$0xff]  ;;  %s401_s26 = smov [#allocation9]  }
  0x38   :  { %v79_v5 = vld [vmem:[#allocation6 + $0x8] sm:$0xff]  ;;  %v94_v6 = vmul.f32 %v78_v4, %v62_v2  ;;  %v65_v9 = vld [vmem:[#allocation8 + $0x18] sm:$0xff]  ;;  %v80_v10 = vld [vmem:[#allocation6 + $0x10] sm:$0xff]  ;;  %s203_s27 = sshll.u32 %s401_s26, 4  ;;  %s204_s27 = int_to_ptr.vmem [resolvable:$true] %s203_s27 }
  0x39   :  { %v95_v7 = vmul.f32 %v79_v5, %v63_v3  ;;  %v81_v11 = vld [vmem:[#allocation6 + $0x18] sm:$0xff]  ;;  %v96_v13 = vmul.f32 %v80_v10, %v64_v8  ;;  %v66_v16 = vld [vmem:[#allocation8 + $0x20] sm:$0xff]  ;;  %v67_v17 = vld [vmem:[#allocation8 + $0x28] sm:$0xff]  ;;  %s365_s28 = scalar_lea.vmem %s204_s27, 128  ;;  %p370_p11 = scmp.lt.s32.totalorder %s204_s27, %s204_s27 }
  0x3a   :  { %v97_v14 = vmul.f32 %v81_v11, %v65_v9  ;;  %v82_v18 = vld [vmem:[#allocation6 + $0x20] sm:$0xff]  ;;  %v83_v19 = vld [vmem:[#allocation6 + $0x28] sm:$0xff]  ;;  %v68_v23 = vld [vmem:[#allocation8 + $0x30] sm:$0xff]  ;;  %p366_p10 = scmp.ne.s32.totalorder %s204_s27, %s365_s28  ;;  %p371_p12 = scmp.lt.s32.totalorder %s365_s28, %s365_s28 }
  0x3b   :  { %v267_v12 = vpack.c.bf16 %v95_v7, %v94_v6  ;;  %v98_v20 = vmul.f32 %v82_v18, %v66_v16  ;;  %v99_v21 = vmul.f32 %v83_v19, %v67_v17  ;;  %v69_v24 = vld [vmem:[#allocation8 + $0x38] sm:$0xff]  ;;  %v84_v25 = vld [vmem:[#allocation6 + $0x30] sm:$0xff]  ;;  %v70_v30 = vld [vmem:[#allocation8 + $0x40] sm:$0xff] }
  0x3c   :  { %v270_v15 = vpack.c.bf16 %v97_v14, %v96_v13  ;;  %v85_v26 = vld [vmem:[#allocation6 + $0x38] sm:$0xff]  ;;  %v100_v27 = vmul.f32 %v84_v25, %v68_v23  ;;  %v71_v31 = vld [vmem:[#allocation8 + $0x48] sm:$0xff]  ;;  %v86_v32 = vld [vmem:[#allocation6 + $0x40] sm:$0xff]  ;;  %p372_p13 = por %p371_p12, %p370_p11 }
  0x3d   :  { %268 = vmatpush3.bf16.xpose.msra.mxu0 %v267_v12  ;;  %v273_v22 = vpack.c.bf16 %v99_v21, %v98_v20  ;;  %v101_v28 = vmul.f32 %v85_v26, %v69_v24  ;;  %v87_v33 = vld [vmem:[#allocation6 + $0x48] sm:$0xff]  ;;  %v102_v34 = vmul.f32 %v86_v32, %v70_v30  ;;  %v72_v37 = vld [vmem:[#allocation8 + $0x50] sm:$0xff]  ;;  %v73_v38 = vld [vmem:[#allocation8 + $0x58] sm:$0xff] }
  0x3e   :  { %269 = vmatprep.subr.bf16.mxu0 %v398_v0  ;;  %v103_v35 = vmul.f32 %v87_v33, %v71_v31  ;;  %v88_v39 = vld [vmem:[#allocation6 + $0x50] sm:$0xff]  ;;  %v89_v40 = vld [vmem:[#allocation6 + $0x58] sm:$0xff]  ;;  %v74_v44 = vld [vmem:[#allocation8 + $0x60] sm:$0xff]  ;;  %p373_p0 = pnand %p372_p13, %p366_p10 }
  0x3f   :  { %v276_v29 = vpack.c.bf16 %v101_v28, %v100_v27  ;;  %v104_v41 = vmul.f32 %v88_v39, %v72_v37  ;;  %v105_v42 = vmul.f32 %v89_v40, %v73_v38  ;;  %v75_v45 = vld [vmem:[#allocation8 + $0x68] sm:$0xff]  ;;  %v90_v46 = vld [vmem:[#allocation6 + $0x60] sm:$0xff]  ;;  %v76_v51 = vld [vmem:[#allocation8 + $0x70] sm:$0xff] }
  0x40   :  { %v279_v36 = vpack.c.bf16 %v103_v35, %v102_v34  ;;  %v91_v47 = vld [vmem:[#allocation6 + $0x68] sm:$0xff]  ;;  %v106_v48 = vmul.f32 %v90_v46, %v74_v44  ;;  %v77_v52 = vld [vmem:[#allocation8 + $0x78] sm:$0xff]  ;;  %v92_v53 = vld [vmem:[#allocation6 + $0x70] sm:$0xff] }
  0x41   :  { %v282_v43 = vpack.c.bf16 %v105_v42, %v104_v41  ;;  %v107_v49 = vmul.f32 %v91_v47, %v75_v45  ;;  %v93_v54 = vld [vmem:[#allocation6 + $0x78] sm:$0xff]  ;;  %v108_v55 = vmul.f32 %v92_v53, %v76_v51 }
  0x42   :  { %v109_v56 = vmul.f32 %v93_v54, %v77_v52  ;;  %v111_v58 = vld [vmem:[#allocation3] sm:$0xff] }
  0x43   :  { %v285_v50 = vpack.c.bf16 %v107_v49, %v106_v48  ;;  %v213_v59 = vld [vmem:[%s495_s3] ss:$0 sm:$0xff] }
  0x44   :  { %v288_v57 = vpack.c.bf16 %v109_v56, %v108_v55 }
  0x45   :  { %271 = vmatpush3.bf16.xpose.msra.mxu0 %v270_v15 }
  0x46   :  { %272 = vmatprep.subr.bf16.mxu0 %v398_v0 }
  0x4d   :  { %274 = vmatpush3.bf16.xpose.msra.mxu0 %v273_v22 }
  0x4e   :  { %275 = vmatprep.subr.bf16.mxu0 %v398_v0 }
  0x55   :  { %277 = vmatpush3.bf16.xpose.msra.mxu0 %v276_v29 }
  0x56   :  { %278 = vmatprep.subr.bf16.mxu0 %v398_v0 }
  0x5d   :  { %280 = vmatpush3.bf16.xpose.msra.mxu0 %v279_v36 }
  0x5e   :  { %281 = vmatprep.subr.bf16.mxu0 %v398_v0 }
  0x65   :  { %283 = vmatpush3.bf16.xpose.msra.mxu0 %v282_v43 }
  0x66   :  { %284 = vmatprep.subr.bf16.mxu0 %v398_v0 }
  0x6d   :  { %286 = vmatpush3.bf16.xpose.msra.mxu0 %v285_v50 }
  0x6e   :  { %287 = vmatprep.subr.bf16.mxu0 %v398_v0 }
  0x75   :  { %289 = vmatpush3.bf16.xpose.msra.mxu0 %v288_v57 }
  0x7c   :  { %264 = vmatmul.mubr.f32.vlgmr.msra.gmra.mrb[0].mxu0 %v111_v58 }
 0x14f   :  { %v178_v60 = vpop.f32.mrb[0].mxu0 }
 0x150   :  { %v195_v61 = vadd.f32 %v213_v59, %v178_v60  ;;  %v265_v62 = vpop.f32.mrb[1].mxu0 }
 0x152   :  { %196 = vst [vmem:[#allocation9] sm:$0xff] %v195_v61 }
 0x153   :  { %376 = shalt.err (!%p373_p0)
}
 0x154   :  { %s377_s5 = scalar_lea.hbm %s496_s4, 128 }
 0x155   :  { %p378_p1 = scmp.ne.s32.totalorder %s496_s4, %s377_s5  ;;  %p381_p2 = scmp.lt.u32.totalorder %s377_s5, %s496_s4 }
 0x157   :  { %p383_p3 = pnand %p381_p2, %p378_p1 }
 0x159   :  { %386 = shalt.err (!%p383_p3)
}
 0x15a   :  { %206 = dma.vmem_to_hbm [thread:$0]  %s204_s27, 128, %s496_s4, [#allocation5]  }
 0x15b   :  { %391 = dma.done.wait [#allocation5], 128  }
 0x15c   :  { %392 = vsyncadd [#allocation5], 4294967168 }
 0x15d   :  { %210 = vsyncpa [#allocation4], 1 }
 0x15e   :  { %211 = vsyncpa [#allocation7], 1 }
 0x15f   :  { %212 = vsyncpa [#allocation5], 1 }

</bundles_post_ra>
